<compile_context>
chip_gen: v6e
topology: v6e:2x2x1
jax: 0.10.0
libtpu: 0.0.40
codegen_flags: <defaults>
</compile_context>

<pallas_src>
import numpy as np
import jax
import jax.numpy as jnp
from jax.experimental import pallas as pl
from jax.experimental.pallas import tpu as pltpu

# Per-step live block bytes (x blk + y blk + out blk) for ONE buffer set.
# Pallas double-buffers each spec, so peak VMEM ~= 2x this.
_BLOCK_BYTES_BUDGET = 8 * 1024 * 1024
_VMEM_LIMIT_BYTES = 32 * 1024 * 1024


def _sublane_pack(dtype):
    # 8 sublanes of 32-bit; sub-32-bit dtypes pack 2x / 4x along sublanes.
    return max(8, 32 // jnp.dtype(dtype).itemsize)


def _round_up(v, m):
    return ((v + m - 1) // m) * m


def _compiler_params(n_grid_dims):
    return pltpu.CompilerParams(
        dimension_semantics=("parallel",) * n_grid_dims,
        vmem_limit_bytes=_VMEM_LIMIT_BYTES,
    )


def _concat_lanes_kernel(x_ref, y_ref, o_ref):
    # x_ref: (tp, Wx), y_ref: (tp, Wy), o_ref: (tp, Wx + Wy) — VMEM tiles.
    wx = x_ref.shape[1]
    o_ref[:, :wx] = x_ref[...]
    o_ref[:, wx:] = y_ref[...]


def _concat_sublanes_kernel(x_ref, y_ref, o_ref):
    # x_ref: (1, cx, ts), y_ref: (1, cy, ts), o_ref: (1, cx + cy, ts).
    cx = x_ref.shape[1]
    o_ref[:, :cx, :] = x_ref[...]
    o_ref[:, cx:, :] = y_ref[...]


def _concat_lanes(x2, y2, prefix, wx, wy, itemsize, dtype):
    """2D lane-concat: x2 (prefix, wx), y2 (prefix, wy) -> (prefix, wx+wy)."""
    row_bytes = 2 * (wx + wy) * itemsize                 # x + y + out per row
    tp = max(1, _BLOCK_BYTES_BUDGET // row_bytes)
    if tp >= prefix:
        tp = prefix                                      # full extent
    else:
        sub = _sublane_pack(dtype)
        tp = max(sub, (tp // sub) * sub)                 # sublane-aligned tile
    # TODO(synk): a giant 1-D concat (prefix == 1, suffix == 1, cx + cy in the
    # multi-million range) can still exceed the budget here; that case would
    # need lane tiling split at the x/y boundary (two aliased pallas_calls).
    return pl.pallas_call(
        _concat_lanes_kernel,
        out_shape=jax.ShapeDtypeStruct((prefix, wx + wy), dtype),
        grid=(pl.cdiv(prefix, tp),),
        in_specs=[
            pl.BlockSpec((tp, wx), lambda i: (i, 0)),
            pl.BlockSpec((tp, wy), lambda i: (i, 0)),
        ],
        out_specs=pl.BlockSpec((tp, wx + wy), lambda i: (i, 0)),
        compiler_params=_compiler_params(1),
    )(x2, y2)


def _concat_sublanes(x3, y3, prefix, cx, cy, suffix, itemsize, dtype):
    """3D sublane-concat: x3 (prefix, cx, S), y3 (prefix, cy, S)."""
    sub = _sublane_pack(dtype)
    # Account for sublane padding of the small middle axis in VMEM.
    col_bytes = (_round_up(cx, sub) + _round_up(cy, sub)
                 + _round_up(cx + cy, sub)) * itemsize
    ts = max(1, _BLOCK_BYTES_BUDGET // col_bytes)
    if ts >= suffix:
        ts = suffix                                      # full extent
    else:
        ts = max(128, (ts // 128) * 128)                 # lane-aligned tile
    return pl.pallas_call(
        _concat_sublanes_kernel,
        out_shape=jax.ShapeDtypeStruct((prefix, cx + cy, suffix), dtype),
        grid=(prefix, pl.cdiv(suffix, ts)),
        in_specs=[
            pl.BlockSpec((1, cx, ts), lambda i, j: (i, 0, j)),
            pl.BlockSpec((1, cy, ts), lambda i, j: (i, 0, j)),
        ],
        out_specs=pl.BlockSpec((1, cx + cy, ts), lambda i, j: (i, 0, j)),
        compiler_params=_compiler_params(2),
    )(x3, y3)


def concat(x, y, dim=1):
    """Pallas equivalent of torch.cat((x, y), dim=dim)."""
    assert x.ndim == y.ndim and x.ndim >= 1, "inputs must have the same rank"
    assert x.dtype == y.dtype, "dtypes must match"
    dim = dim % x.ndim
    for ax in range(x.ndim):
        if ax != dim:
            assert x.shape[ax] == y.shape[ax], "non-concat dims must match"

    cx, cy = x.shape[dim], y.shape[dim]
    out_shape = list(x.shape)
    out_shape[dim] = cx + cy
    out_shape = tuple(out_shape)

    # Degenerate cases: one side empty, or empty output.
    if cx == 0:
        return jnp.reshape(y, out_shape)
    if cy == 0:
        return jnp.reshape(x, out_shape)
    if int(np.prod(out_shape, dtype=np.int64)) == 0:
        return jnp.zeros(out_shape, dtype=x.dtype)

    prefix = int(np.prod(x.shape[:dim], dtype=np.int64))
    suffix = int(np.prod(x.shape[dim + 1:], dtype=np.int64))
    itemsize = jnp.dtype(x.dtype).itemsize
    sub = _sublane_pack(x.dtype)

    wx, wy = cx * suffix, cy * suffix
    # Smallest legal prefix tile for the lane-concat path.
    min_tp = prefix if prefix <= sub else sub
    lane_block_fits = min_tp * 2 * (wx + wy) * itemsize <= _BLOCK_BYTES_BUDGET

    if suffix == 1 or (prefix > 1 and lane_block_fits):
        # Lane-concat path: collapse (concat_dim, suffix) onto lanes.
        out2 = _concat_lanes(
            x.reshape(prefix, wx), y.reshape(prefix, wy),
            prefix, wx, wy, itemsize, x.dtype)
    else:
        # Sublane-concat path: prefix == 1, or rows too wide for one block.
        out2 = _concat_sublanes(
            x.reshape(prefix, cx, suffix), y.reshape(prefix, cy, suffix),
            prefix, cx, cy, suffix, itemsize, x.dtype)

    return out2.reshape(out_shape)


class Concat:
    """Mirror of the PyTorch nn.Module interface."""

    def __call__(self, x, y, dim=1):
        return concat(x, y, dim=dim)


if __name__ == "__main__":
    key = jax.random.PRNGKey(0)
    kx, ky = jax.random.split(key)

    # NCHW inputs: batch=2, channels=4, spatial=16x16 (default dim=1).
    x = jax.random.normal(kx, (2, 4, 16, 16), dtype=jnp.float32)
    y = jax.random.normal(ky, (2, 4, 16, 16), dtype=jnp.float32)

    mod = Concat()

    def check(out, ref, shape):
        assert out.shape == shape, (out.shape, shape)
        np.testing.assert_array_equal(np.asarray(out), np.asarray(ref))

    # Default channel concat (lane-concat path).
    out = jax.block_until_ready(mod(x, y, dim=1))
    check(out, jnp.concatenate((x, y), axis=1), (2, 8, 16, 16))

    # Last-axis concat (suffix == 1, lane-concat path).
    out3 = jax.block_until_ready(mod(x, y, dim=3))
    check(out3, jnp.concatenate((x, y), axis=3), (2, 4, 16, 32))

    # Middle-axis concat (lane-concat path with prefix tiling).
    out2 = jax.block_until_ready(mod(x, y, dim=2))
    check(out2, jnp.concatenate((x, y), axis=2), (2, 4, 32, 16))

    # Leading-axis concat (prefix == 1, sublane-concat path).
    out0 = jax.block_until_ready(mod(x, y, dim=0))
    check(out0, jnp.concatenate((x, y), axis=0), (4, 4, 16, 16))

    # bf16 coverage (packed sublane dtype, bit-exact pure copy).
    xb = x.astype(jnp.bfloat16)
    yb = y.astype(jnp.bfloat16)
    outb = jax.block_until_ready(mod(xb, yb, dim=1))
    check(outb, jnp.concatenate((xb, yb), axis=1), (2, 8, 16, 16))

    # Exercise the wide-row fallback (3D sublane-concat with prefix > 1) by
    # temporarily shrinking the block budget so the lane path can't fit.
    _saved_budget = _BLOCK_BYTES_BUDGET
    _BLOCK_BYTES_BUDGET = 1024
    outw = jax.block_until_ready(mod(x, y, dim=1))
    check(outw, jnp.concatenate((x, y), axis=1), (2, 8, 16, 16))
    _BLOCK_BYTES_BUDGET = _saved_budget

    print("KERNEL_OK")
</pallas_src>

<mosaic_0001>
module attributes {stable_mosaic.version = 11 : i64} {
  func.func @_concat_lanes_kernel(%arg0: i32, %arg1: memref<2x1024xf32, #tpu.memory_space<vmem>>, %arg2: memref<2x1024xf32, #tpu.memory_space<vmem>>, %arg3: memref<2x2048xf32, #tpu.memory_space<vmem>>) attributes {dimension_semantics = [#tpu.dimension_semantics<parallel>], iteration_bounds = array<i64: 1>, scalar_prefetch = 0 : i64, scratch_operands = 0 : i64, tpu.core_type = #tpu.core_type<tc>, window_params = [{transform_indices = @transform_0, window_bounds = array<i64: 2, 1024>}, {transform_indices = @transform_1, window_bounds = array<i64: 2, 1024>}, {transform_indices = @transform_2, window_bounds = array<i64: 2, 2048>}]} {
    %c0 = arith.constant 0 : index
    %c0_0 = arith.constant 0 : index
    %0 = vector.load %arg1[%c0, %c0_0] : memref<2x1024xf32, #tpu.memory_space<vmem>>, vector<2x1024xf32>
    %c0_1 = arith.constant 0 : index
    %c0_2 = arith.constant 0 : index
    %1 = vector.load %arg3[%c0_1, %c0_2] : memref<2x2048xf32, #tpu.memory_space<vmem>>, vector<2x1024xf32>
    tpu.vector_store %arg3[%c0_1, %c0_2], %0 {strides = array<i32>} : memref<2x2048xf32, #tpu.memory_space<vmem>>, vector<2x1024xf32>,
    %c0_3 = arith.constant 0 : index
    %c0_4 = arith.constant 0 : index
    %2 = vector.load %arg2[%c0_3, %c0_4] : memref<2x1024xf32, #tpu.memory_space<vmem>>, vector<2x1024xf32>
    %c0_5 = arith.constant 0 : index
    %c1024 = arith.constant 1024 : index
    %3 = vector.load %arg3[%c0_5, %c1024] : memref<2x2048xf32, #tpu.memory_space<vmem>>, vector<2x1024xf32>
    tpu.vector_store %arg3[%c0_5, %c1024], %2 {strides = array<i32>} : memref<2x2048xf32, #tpu.memory_space<vmem>>, vector<2x1024xf32>,
    return
  }
  func.func @transform_0(%arg0: i32) -> (i32, i32) {
    %c0_i32 = arith.constant 0 : i32
    %c0_i32_0 = arith.constant 0 : i32
    return %arg0, %c0_i32 : i32, i32
  }
  func.func @transform_1(%arg0: i32) -> (i32, i32) {
    %c0_i32 = arith.constant 0 : i32
    %c0_i32_0 = arith.constant 0 : i32
    return %arg0, %c0_i32 : i32, i32
  }
  func.func @transform_2(%arg0: i32) -> (i32, i32) {
    %c0_i32 = arith.constant 0 : i32
    %c0_i32_0 = arith.constant 0 : i32
    return %arg0, %c0_i32 : i32, i32
  }
}

</mosaic_0001>

<bundles_post_ra>
// kernel: tpu_custom_call.1
= control target key start
LH: loop header
LB: loop body
LE: loop exit
PB: predicated region body
PF: predicated region fallthrough
CT: control target
= control target key end

     0   :  { %7 = vsyncpa [#allocation3], 0  ;;  %s156_s0 = inlined_call_operand.hbm [shape: f32[2,1024], index: 0, kind: input, shape index: {}]   ;;  %s157_s1 = inlined_call_operand.hbm [shape: f32[2,1024], index: 1, kind: input, shape index: {}]   ;;  %s158_s2 = inlined_call_operand.hbm [shape: f32[2,2048], index: 2, kind: output, shape index: {}]  }
   0x1   :  { %8 = vsyncpa [#allocation6], 0 }
   0x2   :  { %9 = vsyncpa [#allocation4], 0  ;;  %s129_s9 = smov [#allocation2]   ;;  %s130_s11 = smov [#allocation5]  }
   0x3   :  { %s16_s10 = sshll.u32 %s129_s9, 4  ;;  %s26_s12 = sshll.u32 %s130_s11, 4  ;;  %s17_s10 = int_to_ptr.vmem [resolvable:$true] %s16_s10  ;;  %s27_s12 = int_to_ptr.vmem [resolvable:$true] %s26_s12 }
   0x4   :  { %s71_s13 = scalar_lea.vmem %s17_s10, 256  ;;  %p76_p1 = scmp.lt.s32.totalorder %s17_s10, %s17_s10 }
   0x5   :  { %p72_p0 = scmp.ne.s32.totalorder %s17_s10, %s71_s13  ;;  %p77_p2 = scmp.lt.s32.totalorder %s71_s13, %s71_s13 }
   0x7   :  { %p78_p3 = por %p77_p2, %p76_p1 }
   0x9   :  { %p79_p4 = pnand %p78_p3, %p72_p0 }
   0xb   :  { %82 = shalt.err (!%p79_p4)
}
   0xc   :  { %19 = dma.hbm_to_vmem [thread:$0]  %s156_s0, 256, %s17_s10, [#allocation3]  }
   0xd   :  { %s91_s16 = scalar_lea.vmem %s27_s12, 256  ;;  %p96_p6 = scmp.lt.s32.totalorder %s27_s12, %s27_s12 }
   0xe   :  { %p92_p5 = scmp.ne.s32.totalorder %s27_s12, %s91_s16  ;;  %p97_p7 = scmp.lt.s32.totalorder %s91_s16, %s91_s16 }
  0x10   :  { %p98_p8 = por %p97_p7, %p96_p6 }
  0x12   :  { %p99_p9 = pnand %p98_p8, %p92_p5 }
  0x14   :  { %102 = shalt.err (!%p99_p9)
}
  0x15   :  { %29 = dma.hbm_to_vmem [thread:$0]  %s157_s1, 256, %s27_s12, [#allocation6]  }
  0x16   :  { %123 = dma.done.wait [#allocation3], 256  }
  0x17   :  { %124 = vsyncadd [#allocation3], 4294967040 }
  0x18   :  { %125 = dma.done.wait [#allocation6], 256  }
  0x19   :  { %126 = vsyncadd [#allocation6], 4294967040  ;;  %s131_s19 = smov [#allocation7]   ;;  %v36_v0 = vld [vmem:[#allocation2] sm:$0xff]  ;;  %v37_v1 = vld [vmem:[#allocation2 + $0x8] sm:$0xff] }
  0x1a   :  { %s50_s20 = sshll.u32 %s131_s19, 4  ;;  %v40_v2 = vld [vmem:[#allocation5] sm:$0xff]  ;;  %38 = vst [vmem:[#allocation7] sm:$0xff] %v36_v0  ;;  %39 = vst [vmem:[#allocation7 + $0x8] sm:$0xff] %v37_v1  ;;  %v41_v3 = vld [vmem:[#allocation5 + $0x8] sm:$0xff]  ;;  %s51_s20 = int_to_ptr.vmem [resolvable:$true] %s50_s20 }
  0x1b   :  { %42 = vst [vmem:[#allocation7 + $0x10] sm:$0xff] %v40_v2  ;;  %43 = vst [vmem:[#allocation7 + $0x18] sm:$0xff] %v41_v3  ;;  %s103_s0 = scalar_lea.vmem %s51_s20, 512  ;;  %p108_p11 = scmp.lt.s32.totalorder %s51_s20, %s51_s20 }
  0x1c   :  { %p104_p10 = scmp.ne.s32.totalorder %s51_s20, %s103_s0  ;;  %p109_p12 = scmp.lt.s32.totalorder %s103_s0, %s103_s0 }
  0x1e   :  { %p110_p13 = por %p109_p12, %p108_p11 }
  0x20   :  { %p111_p0 = pnand %p110_p13, %p104_p10 }
  0x22   :  { %114 = shalt.err (!%p111_p0)
}
  0x23   :  { %53 = dma.vmem_to_hbm [thread:$0]  %s51_s20, 512, %s158_s2, [#allocation4]  }
  0x24   :  { %127 = dma.done.wait [#allocation4], 512  }
  0x25   :  { %128 = vsyncadd [#allocation4], 4294966784 }
  0x26   :  { %57 = vsyncpa [#allocation3], 1 }
  0x27   :  { %58 = vsyncpa [#allocation6], 1 }
  0x28   :  { %59 = vsyncpa [#allocation4], 1 }

</bundles_post_ra>
